<compile_context>
chip_gen: v7x
topology: tpu7x:2x2x1
jax: 0.10.0
libtpu: 0.0.40
codegen_flags: <defaults>
</compile_context>

<pallas_src>
import jax
import jax.numpy as jnp
from jax.experimental import pallas as pl
from jax.experimental.pallas import tpu as pltpu

_LANE = 128
_SUBLANE = 8


def _round_up(n, m):
    return ((n + m - 1) // m) * m


def policy_kernel(x_ref, w1_ref, b1_ref, w2_ref, b2_ref, out_ref):
    # fc1: bf16 operands on the MXU, f32 accumulate; bias + relu in f32.
    h = jnp.dot(x_ref[...], w1_ref[...], preferred_element_type=jnp.float32)
    h = jnp.maximum(h + b1_ref[...], 0.0)

    # fc2: cast activations to bf16 for the MXU, accumulate f32, bias in f32.
    logits = jnp.dot(h.astype(jnp.bfloat16), w2_ref[...],
                     preferred_element_type=jnp.float32) + b2_ref[...]

    # Numerically stable softmax over the (padded, lane-dense) last axis.
    # Padded columns carry a -inf bias -> exp() is exactly 0 there, so they do
    # not perturb the denominator and the real columns still sum to 1.
    m = jnp.max(logits, axis=-1, keepdims=True)
    e = jnp.exp(logits - m)
    denom = jnp.sum(e, axis=-1, keepdims=True)
    out_ref[...] = (e * pl.reciprocal(denom, approx=False)).astype(out_ref.dtype)


def policy_network_forward(x, w1, b1, w2, b2, *, block_b=None):
    """x: [B, input_dim] f32. w1: [input_dim, hidden], b1: [hidden],
    w2: [hidden, output_dim], b2: [output_dim].
    Returns [B, output_dim] softmax probabilities (torch dim=1)."""
    B, input_dim = x.shape
    hidden = w1.shape[1]
    output_dim = w2.shape[1]

    # Bounded batch tile: multiple of 8 sublanes, capped so VMEM stays small on
    # v7x (64 MiB) while still amortizing the ~0.35us/step overhead for big B.
    if block_b is None:
        block_b = min(1024, _round_up(B, _SUBLANE))
    block_b = max(_SUBLANE, (block_b // _SUBLANE) * _SUBLANE)

    # Pad the batch so no remainder rows are dropped; padded rows are sliced off.
    B_pad = _round_up(B, block_b)
    if B_pad != B:
        x = jnp.pad(x, ((0, B_pad - B), (0, 0)))

    # Lane-dense output: pad N up to a multiple of 128.  Padded weight columns
    # are zero, padded bias entries are -inf so softmax assigns them prob 0.
    n_pad = _round_up(output_dim, _LANE)
    w2_p = jnp.zeros((hidden, n_pad), jnp.float32).at[:, :output_dim].set(
        w2.astype(jnp.float32))
    b2_p = jnp.full((1, n_pad), -jnp.inf, jnp.float32).at[0, :output_dim].set(
        b2.astype(jnp.float32))

    # bf16 MXU operands; biases stay f32 for the elementwise path.
    x_bf = x.astype(jnp.bfloat16)
    w1_bf = w1.astype(jnp.bfloat16)
    w2_bf = w2_p.astype(jnp.bfloat16)
    b1_2d = b1.astype(jnp.float32).reshape(1, hidden)

    grid = (B_pad // block_b,)
    out_p = pl.pallas_call(
        policy_kernel,
        out_shape=jax.ShapeDtypeStruct((B_pad, n_pad), jnp.float32),
        grid_spec=pltpu.PrefetchScalarGridSpec(
            num_scalar_prefetch=0,
            grid=grid,
            in_specs=[
                pl.BlockSpec((block_b, input_dim), lambda i: (i, 0)),
                # Weights / biases are grid-invariant (constant index_map).
                pl.BlockSpec((input_dim, hidden), lambda i: (0, 0)),
                pl.BlockSpec((1, hidden), lambda i: (0, 0)),
                pl.BlockSpec((hidden, n_pad), lambda i: (0, 0)),
                pl.BlockSpec((1, n_pad), lambda i: (0, 0)),
            ],
            out_specs=pl.BlockSpec((block_b, n_pad), lambda i: (i, 0)),
        ),
        compiler_params=pltpu.CompilerParams(
            dimension_semantics=("parallel",),
        ),
    )(x_bf, w1_bf, b1_2d, w2_bf, b2_p)

    return out_p[:B, :output_dim]


def init_params(key, input_dim, hidden, output_dim):
    # Mimics PyTorch Linear default init: U(-1/sqrt(fan_in), 1/sqrt(fan_in)).
    k1, k2, k3, k4 = jax.random.split(key, 4)
    bound1 = 1.0 / jnp.sqrt(input_dim)
    bound2 = 1.0 / jnp.sqrt(hidden)
    w1 = jax.random.uniform(k1, (input_dim, hidden), jnp.float32, -bound1, bound1)
    b1 = jax.random.uniform(k2, (hidden,), jnp.float32, -bound1, bound1)
    w2 = jax.random.uniform(k3, (hidden, output_dim), jnp.float32, -bound2, bound2)
    b2 = jax.random.uniform(k4, (output_dim,), jnp.float32, -bound2, bound2)
    return w1, b1, w2, b2


def ref_forward(x, w1, b1, w2, b2):
    # Pure-JAX reference with the same bf16-operand / f32-accumulate recipe.
    h = jnp.dot(x.astype(jnp.bfloat16), w1.astype(jnp.bfloat16),
                preferred_element_type=jnp.float32) + b1
    h = jnp.maximum(h, 0.0)
    logits = jnp.dot(h.astype(jnp.bfloat16), w2.astype(jnp.bfloat16),
                     preferred_element_type=jnp.float32) + b2
    return jax.nn.softmax(logits, axis=1)


if __name__ == "__main__":
    key = jax.random.PRNGKey(0)
    input_dim, hidden, output_dim = 32, 512, 16

    kx, kp, kx2 = jax.random.split(key, 3)
    w1, b1, w2, b2 = init_params(kp, input_dim, hidden, output_dim)

    # Case 1: B divisible by the sublane tile.
    B = 8
    x = jax.random.normal(kx, (B, input_dim), jnp.float32)
    out = jax.block_until_ready(policy_network_forward(x, w1, b1, w2, b2))
    ref = ref_forward(x, w1, b1, w2, b2)
    assert out.shape == (B, output_dim)
    assert jnp.allclose(out, ref, atol=1e-4, rtol=1e-4)
    assert jnp.allclose(jnp.sum(out, axis=1), 1.0, atol=1e-5)

    # Case 2: ragged batch (exercises remainder padding -> no dropped rows).
    B2 = 13
    x2 = jax.random.normal(kx2, (B2, input_dim), jnp.float32)
    out2 = jax.block_until_ready(policy_network_forward(x2, w1, b1, w2, b2))
    ref2 = ref_forward(x2, w1, b1, w2, b2)
    assert out2.shape == (B2, output_dim)
    assert jnp.allclose(out2, ref2, atol=1e-4, rtol=1e-4)
    assert jnp.allclose(jnp.sum(out2, axis=1), 1.0, atol=1e-5)

    print("KERNEL_OK")
</pallas_src>

<mosaic_0001>
module attributes {stable_mosaic.version = 11 : i64} {
  func.func @policy_kernel(%arg0: i32, %arg1: memref<8x32xbf16, #tpu.memory_space<vmem>>, %arg2: memref<32x512xbf16, #tpu.memory_space<vmem>>, %arg3: memref<1x512xf32, #tpu.memory_space<vmem>>, %arg4: memref<512x128xbf16, #tpu.memory_space<vmem>>, %arg5: memref<1x128xf32, #tpu.memory_space<vmem>>, %arg6: memref<8x128xf32, #tpu.memory_space<vmem>>) attributes {dimension_semantics = [#tpu.dimension_semantics<parallel>], iteration_bounds = array<i64: 1>, scalar_prefetch = 0 : i64, scratch_operands = 0 : i64, tpu.core_type = #tpu.core_type<tc>, window_params = [{transform_indices = @transform_0, window_bounds = array<i64: 8, 32>}, {pipeline_mode = #tpu.pipeline_mode<synchronous>, transform_indices = @transform_1, window_bounds = array<i64: 32, 512>}, {pipeline_mode = #tpu.pipeline_mode<synchronous>, transform_indices = @transform_2, window_bounds = array<i64: 1, 512>}, {pipeline_mode = #tpu.pipeline_mode<synchronous>, transform_indices = @transform_3, window_bounds = array<i64: 512, 128>}, {pipeline_mode = #tpu.pipeline_mode<synchronous>, transform_indices = @transform_4, window_bounds = array<i64: 1, 128>}, {transform_indices = @transform_5, window_bounds = array<i64: 8, 128>}]} {
    %c0 = arith.constant 0 : index
    %c0_0 = arith.constant 0 : index
    %0 = vector.load %arg1[%c0, %c0_0] : memref<8x32xbf16, #tpu.memory_space<vmem>>, vector<8x32xbf16>
    %c0_1 = arith.constant 0 : index
    %c0_2 = arith.constant 0 : index
    %1 = vector.load %arg2[%c0_1, %c0_2] : memref<32x512xbf16, #tpu.memory_space<vmem>>, vector<32x512xbf16>
    %cst = arith.constant dense<0.000000e+00> : vector<8x512xf32>
    %2 = tpu.matmul %0, %1, %cst {dimension_numbers = #tpu.dot_dimension_numbers<[1], [0], [0], [1], [0, 0, 1, 1], [], []>} : vector<8x32xbf16>, vector<32x512xbf16>, vector<8x512xf32> -> vector<8x512xf32>
    %c0_3 = arith.constant 0 : index
    %c0_4 = arith.constant 0 : index
    %3 = vector.load %arg3[%c0_3, %c0_4] : memref<1x512xf32, #tpu.memory_space<vmem>>, vector<1x512xf32>
    %4 = vector.broadcast %3 : vector<1x512xf32> to vector<8x512xf32>
    %5 = arith.addf %2, %4 : vector<8x512xf32>
    %cst_5 = arith.constant 0.000000e+00 : f32
    %6 = vector.broadcast %cst_5 : f32 to vector<8x512xf32>
    %7 = arith.maximumf %5, %6 : vector<8x512xf32>
    %8 = arith.truncf %7 : vector<8x512xf32> to vector<8x512xbf16>
    %c0_6 = arith.constant 0 : index
    %c0_7 = arith.constant 0 : index
    %9 = vector.load %arg4[%c0_6, %c0_7] : memref<512x128xbf16, #tpu.memory_space<vmem>>, vector<512x128xbf16>
    %cst_8 = arith.constant dense<0.000000e+00> : vector<8x128xf32>
    %10 = tpu.matmul %8, %9, %cst_8 {dimension_numbers = #tpu.dot_dimension_numbers<[1], [0], [0], [1], [0, 0, 1, 1], [], []>} : vector<8x512xbf16>, vector<512x128xbf16>, vector<8x128xf32> -> vector<8x128xf32>
    %c0_9 = arith.constant 0 : index
    %c0_10 = arith.constant 0 : index
    %11 = vector.load %arg5[%c0_9, %c0_10] : memref<1x128xf32, #tpu.memory_space<vmem>>, vector<1x128xf32>
    %12 = vector.broadcast %11 : vector<1x128xf32> to vector<8x128xf32>
    %13 = arith.addf %10, %12 : vector<8x128xf32>
    %cst_11 = arith.constant dense<0xFF800000> : vector<8xf32>
    %14 = vector.multi_reduction <maximumf>, %13, %cst_11 [1] : vector<8x128xf32> to vector<8xf32>
    %15 = vector.shape_cast %14 : vector<8xf32> to vector<8x1xf32>
    %16 = vector.broadcast %15 : vector<8x1xf32> to vector<8x128xf32>
    %17 = arith.subf %13, %16 : vector<8x128xf32>
    %18 = math.exp %17 : vector<8x128xf32>
    %cst_12 = arith.constant dense<0.000000e+00> : vector<8xf32>
    %19 = vector.multi_reduction <add>, %18, %cst_12 [1] : vector<8x128xf32> to vector<8xf32>
    %20 = vector.shape_cast %19 : vector<8xf32> to vector<8x1xf32>
    %21 = tpu.reciprocal %20 : vector<8x1xf32> -> vector<8x1xf32>
    %22 = vector.broadcast %21 : vector<8x1xf32> to vector<8x128xf32>
    %23 = arith.mulf %18, %22 : vector<8x128xf32>
    %c0_13 = arith.constant 0 : index
    %c0_14 = arith.constant 0 : index
    %24 = vector.load %arg6[%c0_13, %c0_14] : memref<8x128xf32, #tpu.memory_space<vmem>>, vector<8x128xf32>
    tpu.vector_store %arg6[%c0_13, %c0_14], %23 {strides = array<i32>} : memref<8x128xf32, #tpu.memory_space<vmem>>, vector<8x128xf32>,
    return
  }
  func.func @transform_0(%arg0: i32) -> (i32, i32) {
    %c0_i32 = arith.constant 0 : i32
    %c0_i32_0 = arith.constant 0 : i32
    return %arg0, %c0_i32 : i32, i32
  }
  func.func @transform_1(%arg0: i32) -> (i32, i32) {
    %c0_i32 = arith.constant 0 : i32
    %c0_i32_0 = arith.constant 0 : i32
    %c0_i32_1 = arith.constant 0 : i32
    return %c0_i32, %c0_i32_0 : i32, i32
  }
  func.func @transform_2(%arg0: i32) -> (i32, i32) {
    %c0_i32 = arith.constant 0 : i32
    %c0_i32_0 = arith.constant 0 : i32
    %c0_i32_1 = arith.constant 0 : i32
    return %c0_i32, %c0_i32_0 : i32, i32
  }
  func.func @transform_3(%arg0: i32) -> (i32, i32) {
    %c0_i32 = arith.constant 0 : i32
    %c0_i32_0 = arith.constant 0 : i32
    %c0_i32_1 = arith.constant 0 : i32
    return %c0_i32, %c0_i32_0 : i32, i32
  }
  func.func @transform_4(%arg0: i32) -> (i32, i32) {
    %c0_i32 = arith.constant 0 : i32
    %c0_i32_0 = arith.constant 0 : i32
    %c0_i32_1 = arith.constant 0 : i32
    return %c0_i32, %c0_i32_0 : i32, i32
  }
  func.func @transform_5(%arg0: i32) -> (i32, i32) {
    %c0_i32 = arith.constant 0 : i32
    %c0_i32_0 = arith.constant 0 : i32
    return %arg0, %c0_i32 : i32, i32
  }
}

</mosaic_0001>

<bundles_post_ra>
// kernel: tpu_custom_call.1
= control target key start
LH: loop header
LB: loop body
LE: loop exit
PB: predicated region body
PF: predicated region fallthrough
CT: control target
= control target key end

     0   :  { %10 = vsyncpa [#allocation3], 0  ;;  %s926_s0 = inlined_call_operand.hbm [shape: bf16[8,32], index: 0, kind: input, shape index: {}]   ;;  %s927_s1 = inlined_call_operand.hbm [shape: bf16[32,512], index: 1, kind: input, shape index: {}]   ;;  %s928_s2 = inlined_call_operand.vmem [shape: f32[1,512], index: 2, kind: input, shape index: {}]   ;;  %s929_s3 = inlined_call_operand.hbm [shape: bf16[512,128], index: 3, kind: input, shape index: {}]   ;;  %s930_s4 = inlined_call_operand.vmem [shape: f32[1,128], index: 4, kind: input, shape index: {}]   ;;  %s931_s5 = inlined_call_operand.hbm [shape: f32[8,128], index: 5, kind: output, shape index: {}]  }
   0x1   :  { %11 = vsyncpa [#allocation6], 0 }
   0x2   :  { %12 = vsyncpa [#allocation4], 0  ;;  %s833_s18 = smov [#allocation5]   ;;  %s739_s22 = scalar_lea.hbm %s927_s1, 1024 }
   0x3   :  { %s28_s19 = sshll.u32 %s833_s18, 4  ;;  %p740_p0 = scmp.ne.s32.totalorder %s927_s1, %s739_s22  ;;  %s29_s19 = int_to_ptr.vmem [resolvable:$true] %s28_s19 }
   0x4   :  { %p743_p1 = scmp.lt.u32.totalorder %s739_s22, %s927_s1 }
   0x6   :  { %p745_p2 = pnand %p743_p1, %p740_p0 }
   0x8   :  { %748 = shalt.err (!%p745_p2)
}
   0x9   :  { %s749_s27 = scalar_lea.vmem %s29_s19, 1024  ;;  %p754_p4 = scmp.lt.s32.totalorder %s29_s19, %s29_s19 }
   0xa   :  { %p750_p3 = scmp.ne.s32.totalorder %s29_s19, %s749_s27  ;;  %p755_p5 = scmp.lt.s32.totalorder %s749_s27, %s749_s27 }
   0xc   :  { %p756_p6 = por %p755_p5, %p754_p4 }
   0xe   :  { %p757_p7 = pnand %p756_p6, %p750_p3 }
  0x10   :  { %760 = shalt.err (!%p757_p7)
}
  0x11   :  { %s834_s28 = smov 256   ;;  %s835_s29 = smov 16  }
  0x12   :  { %34 = dma.hbm_to_vmem [thread:$0]  %s927_s1, 1024, %s29_s19, [#allocation6], %s834_s28, %s834_s28, %s835_s29  }
  0x13   :  { %s836_s7 = smov [#allocation2]   ;;  %s837_s9 = smov [#allocation7]  }
  0x14   :  { %s19_s8 = sshll.u32 %s836_s7, 4  ;;  %s42_s10 = sshll.u32 %s837_s9, 4  ;;  %s20_s8 = int_to_ptr.vmem [resolvable:$true] %s19_s8  ;;  %s43_s10 = int_to_ptr.vmem [resolvable:$true] %s42_s10 }
  0x15   :  { %s761_s13 = scalar_lea.hbm %s926_s0, 64 }
  0x16   :  { %p762_p8 = scmp.ne.s32.totalorder %s926_s0, %s761_s13  ;;  %p765_p9 = scmp.lt.u32.totalorder %s761_s13, %s926_s0 }
  0x18   :  { %p767_p10 = pnand %p765_p9, %p762_p8 }
  0x1a   :  { %770 = shalt.err (!%p767_p10)
}
  0x1b   :  { %s771_s1 = scalar_lea.vmem %s20_s8, 64  ;;  %p776_p12 = scmp.lt.s32.totalorder %s20_s8, %s20_s8 }
  0x1c   :  { %p772_p11 = scmp.ne.s32.totalorder %s20_s8, %s771_s1  ;;  %p777_p13 = scmp.lt.s32.totalorder %s771_s1, %s771_s1 }
  0x1e   :  { %p778_p0 = por %p777_p13, %p776_p12 }
  0x20   :  { %p779_p1 = pnand %p778_p0, %p772_p11 }
  0x22   :  { %782 = shalt.err (!%p779_p1)
}
  0x23   :  { %22 = dma.hbm_to_vmem [thread:$0]  %s926_s0, 64, %s20_s8, [#allocation3]  }
  0x24   :  { %s783_s22 = scalar_lea.hbm %s929_s3, 4096 }
  0x25   :  { %p784_p2 = scmp.ne.s32.totalorder %s929_s3, %s783_s22  ;;  %p787_p3 = scmp.lt.u32.totalorder %s783_s22, %s929_s3 }
  0x27   :  { %p789_p4 = pnand %p787_p3, %p784_p2 }
  0x29   :  { %792 = shalt.err (!%p789_p4)
}
  0x2a   :  { %s793_s27 = scalar_lea.vmem %s43_s10, 4096  ;;  %p798_p6 = scmp.lt.s32.totalorder %s43_s10, %s43_s10 }
  0x2b   :  { %p794_p5 = scmp.ne.s32.totalorder %s43_s10, %s793_s27  ;;  %p799_p7 = scmp.lt.s32.totalorder %s793_s27, %s793_s27 }
  0x2d   :  { %p800_p8 = por %p799_p7, %p798_p6 }
  0x2f   :  { %p801_p9 = pnand %p800_p8, %p794_p5 }
  0x31   :  { %804 = shalt.err (!%p801_p9)
}
  0x32   :  { %s838_s0 = smov 64   ;;  %s839_s28 = smov 4  }
  0x33   :  { %48 = dma.hbm_to_vmem [thread:$0]  %s929_s3, 4096, %s43_s10, [#allocation6], %s838_s0, %s838_s0, %s839_s28  }
  0x34   :  { %827 = dma.done.wait [#allocation3], 64  }
  0x35   :  { %828 = vsyncadd [#allocation3], 4294967232 }
  0x36   :  { %829 = dma.done.wait [#allocation6], 5120  }
  0x37   :  { %830 = vsyncadd [#allocation6], 4294962176  ;;  %v840_v0 = vmov 0   ;;  %v691_v1 = vld [vmem:[#allocation5 + $0x4] ss:$16 sps:$4 sm:$0xff]   ;;  %vm132_vm0 = vcmask 261120   ;;  %v72_v42 = vlaneseq }
  0x38   :  { %168 = vmatprep.mubr.bf16.mxu0 %v840_v0  ;;  %209 = vmatprep.mubr.bf16.mxu1 %v840_v0  ;;  %v693_v2 = vld [vmem:[#allocation5 + $0xc] ss:$16 sps:$4 sm:$0xff]   ;;  %v695_v3 = vld [vmem:[#allocation5] ss:$16 sps:$4 sm:$0xff]   ;;  %v696_v4 = vld [vmem:[#allocation5 + $0x8] ss:$16 sps:$4 sm:$0xff]  }
  0x39   :  { %136 = vmatprep.subr.bf16.mxu0 %v691_v1  ;;  %177 = vmatprep.subr.bf16.mxu1 %v693_v2  ;;  %v697_v5 = vld [vmem:[#allocation5 + $0x24] ss:$16 sps:$4 sm:$0xff]   ;;  %v699_v6 = vld [vmem:[#allocation5 + $0x2c] ss:$16 sps:$4 sm:$0xff]   ;;  %v701_v7 = vld [vmem:[#allocation5 + $0x20] ss:$16 sps:$4 sm:$0xff]  }
  0x3a   :  { %137 = vmatpush1.bf16.msra.mxu0 %v695_v3  ;;  %178 = vmatpush1.bf16.msra.mxu1 %v696_v4  ;;  %v702_v8 = vld [vmem:[#allocation5 + $0x28] ss:$16 sps:$4 sm:$0xff]   ;;  %v61_v9 = vld [vmem:[#allocation2] sm:$0xf]  ;;  %v703_v10 = vld [vmem:[#allocation7 + $0x40] sm:$0xff]   ;;  %v73_v43 = vshrl.u32 %v72_v42, 7 }
  0x3b   :  { %138 = vmatprep.subr.bf16.mxu0 %v697_v5  ;;  %179 = vmatprep.subr.bf16.mxu1 %v699_v6  ;;  %v704_v11 = vld [vmem:[#allocation7 + $0xc0] sm:$0xff]   ;;  %v707_v14 = vld [vmem:[#allocation7 + $0x48] sm:$0xff]   ;;  %v711_v18 = vld [vmem:[#allocation7 + $0x50] sm:$0xff]  }
  0x3c   :  { %v705_v12 = vld [vmem:[#allocation7] sm:$0xff]   ;;  %v708_v15 = vld [vmem:[#allocation7 + $0xc8] sm:$0xff]   ;;  %v712_v19 = vld [vmem:[#allocation7 + $0xd0] sm:$0xff]   ;;  %v74_v44 = vsub.s32 0, %v73_v43  ;;  %v82_v45 = vsub.s32 2, %v73_v43  ;;  %v78_v47 = vsub.s32 1, %v73_v43 }
  0x3d   :  { %v706_v13 = vld [vmem:[#allocation7 + $0x80] sm:$0xff]   ;;  %v709_v16 = vld [vmem:[#allocation7 + $0x8] sm:$0xff]   ;;  %v713_v20 = vld [vmem:[#allocation7 + $0x10] sm:$0xff]   ;;  %v86_v48 = vsub.s32 3, %v73_v43 }
  0x3e   :  { %139 = vmatpush1.bf16.msra.mxu0 %v701_v7  ;;  %180 = vmatpush1.bf16.msra.mxu1 %v702_v8  ;;  %v710_v17 = vld [vmem:[#allocation7 + $0x88] sm:$0xff]   ;;  %v714_v21 = vld [vmem:[#allocation7 + $0x90] sm:$0xff]   ;;  %v715_v22 = vld [vmem:[#allocation7 + $0x58] sm:$0xff]  }
  0x3f   :  { %638 = vmatprep.subr.bf16.mxu0 %v703_v10  ;;  %660 = vmatprep.subr.bf16.mxu1 %v704_v11  ;;  %v716_v23 = vld [vmem:[#allocation7 + $0xd8] sm:$0xff]   ;;  %v719_v26 = vld [vmem:[#allocation7 + $0x60] sm:$0xff]   ;;  %v723_v30 = vld [vmem:[#allocation7 + $0x68] sm:$0xff]  }
  0x40   :  { %v717_v24 = vld [vmem:[#allocation7 + $0x18] sm:$0xff]   ;;  %v720_v27 = vld [vmem:[#allocation7 + $0xe0] sm:$0xff]   ;;  %v724_v31 = vld [vmem:[#allocation7 + $0xe8] sm:$0xff]  }
  0x41   :  { %603 = vmatmul.mubr.msk.bf16.vlgmr.msra.gmra.mrb[0].mxu0 %vm132_vm0, %v61_v9  ;;  %604 = vmatmul.mubr.msk.bf16.vlgmr.msra.gmra.mrb[0].mxu1 %vm132_vm0, %v61_v9  ;;  %v718_v25 = vld [vmem:[#allocation7 + $0x98] sm:$0xff]   ;;  %v721_v28 = vld [vmem:[#allocation7 + $0x20] sm:$0xff]   ;;  %v725_v32 = vld [vmem:[#allocation7 + $0x28] sm:$0xff]  }
  0x42   :  { %639 = vmatpush3.bf16.msra.mxu0 %v705_v12  ;;  %661 = vmatpush3.bf16.msra.mxu1 %v706_v13  ;;  %v722_v29 = vld [vmem:[#allocation7 + $0xa0] sm:$0xff]   ;;  %v726_v33 = vld [vmem:[#allocation7 + $0xa8] sm:$0xff]   ;;  %v727_v34 = vld [vmem:[#allocation7 + $0x70] sm:$0xff]  }
  0x43   :  { %640 = vmatprep.subr.bf16.mxu0 %v707_v14  ;;  %662 = vmatprep.subr.bf16.mxu1 %v708_v15  ;;  %v728_v35 = vld [vmem:[#allocation7 + $0xf0] sm:$0xff]   ;;  %v731_v38 = vld [vmem:[#allocation7 + $0x78] sm:$0xff]  }
  0x44   :  { %v729_v36 = vld [vmem:[#allocation7 + $0x30] sm:$0xff]   ;;  %v732_v39 = vld [vmem:[#allocation7 + $0xf8] sm:$0xff]  }
  0x45   :  { %v730_v37 = vld [vmem:[#allocation7 + $0xb0] sm:$0xff]   ;;  %v733_v40 = vld [vmem:[#allocation7 + $0x38] sm:$0xff]  }
  0x46   :  { %641 = vmatpush3.bf16.msra.mxu0 %v709_v16  ;;  %663 = vmatpush3.bf16.msra.mxu1 %v710_v17  ;;  %v734_v41 = vld [vmem:[#allocation7 + $0xb8] sm:$0xff]  }
  0x47   :  { %642 = vmatprep.subr.bf16.mxu0 %v711_v18  ;;  %664 = vmatprep.subr.bf16.mxu1 %v712_v19  ;;  %v70_v46 = vld [vmem:[%s928_s2] sm:$0xf] }
  0x48   :  { %v75_v49 = vrot.slane %v70_v46, %v74_v44  ;;  %v83_v50 = vrot.slane %v70_v46, %v82_v45  ;;  %v79_v51 = vrot.slane %v70_v46, %v78_v47  ;;  %v87_v52 = vrot.slane %v70_v46, %v86_v48  ;;  %v605_v11 = vld [vmem:[%s930_s4] ss:$0 sm:$0xff]  ;;  %s841_s4 = smov [#allocation8]  }
  0x49   :  { %s585_s8 = sshll.u32 %s841_s4, 4  ;;  %s586_s8 = int_to_ptr.vmem [resolvable:$true] %s585_s8 }
  0x4a   :  { %643 = vmatpush3.bf16.msra.mxu0 %v713_v20  ;;  %665 = vmatpush3.bf16.msra.mxu1 %v714_v21  ;;  %s805_s9 = scalar_lea.vmem %s586_s8, 128  ;;  %p810_p11 = scmp.lt.s32.totalorder %s586_s8, %s586_s8 }
  0x4b   :  { %644 = vmatprep.subr.bf16.mxu0 %v715_v22  ;;  %666 = vmatprep.subr.bf16.mxu1 %v716_v23  ;;  %p806_p10 = scmp.ne.s32.totalorder %s586_s8, %s805_s9  ;;  %p811_p12 = scmp.lt.s32.totalorder %s805_s9, %s805_s9 }
  0x4d   :  { %p812_p13 = por %p811_p12, %p810_p11 }
  0x4e   :  { %645 = vmatpush3.bf16.msra.mxu0 %v717_v24  ;;  %667 = vmatpush3.bf16.msra.mxu1 %v718_v25 }
  0x4f   :  { %646 = vmatprep.subr.bf16.mxu0 %v719_v26  ;;  %668 = vmatprep.subr.bf16.mxu1 %v720_v27  ;;  %p813_p0 = pnand %p812_p13, %p806_p10 }
  0x52   :  { %647 = vmatpush3.bf16.msra.mxu0 %v721_v28  ;;  %669 = vmatpush3.bf16.msra.mxu1 %v722_v29 }
  0x53   :  { %648 = vmatprep.subr.bf16.mxu0 %v723_v30  ;;  %670 = vmatprep.subr.bf16.mxu1 %v724_v31 }
  0x56   :  { %649 = vmatpush3.bf16.msra.mxu0 %v725_v32  ;;  %671 = vmatpush3.bf16.msra.mxu1 %v726_v33 }
  0x57   :  { %650 = vmatprep.subr.bf16.mxu0 %v727_v34  ;;  %672 = vmatprep.subr.bf16.mxu1 %v728_v35 }
  0x5a   :  { %651 = vmatpush3.bf16.msra.mxu0 %v729_v36  ;;  %673 = vmatpush3.bf16.msra.mxu1 %v730_v37 }
  0x5b   :  { %652 = vmatprep.subr.bf16.mxu0 %v731_v38  ;;  %674 = vmatprep.subr.bf16.mxu1 %v732_v39 }
  0x5e   :  { %653 = vmatpush3.bf16.msra.mxu0 %v733_v40  ;;  %675 = vmatpush3.bf16.msra.mxu1 %v734_v41 }
 0x114   :  { %v170_v53 = vpop.f32.mrb[0].mxu0  ;;  %v211_v54 = vpop.f32.mrb[0].mxu1 }
 0x115   :  { %v171_v55 = vadd.f32 %v170_v53, %v75_v49  ;;  %v212_v56 = vadd.f32 %v211_v54, %v83_v50  ;;  %v172_v57 = vpop.f32.mrb[1].mxu0  ;;  %v213_v58 = vpop.f32.mrb[1].mxu1 }
 0x116   :  { %v173_v59 = vadd.f32 %v172_v57, %v79_v51  ;;  %v214_v60 = vadd.f32 %v213_v58, %v87_v52  ;;  %v174_v61 = vpop.f32.mrb[2].mxu0  ;;  %v215_v62 = vpop.f32.mrb[2].mxu1 }
 0x117   :  { %v218_v63 = vmax.f32 %v171_v55, 0.0  ;;  %v220_v0 = vmax.f32 %v212_v56, 0.0  ;;  %v175_v1 = vpop.f32.mrb[3].mxu0  ;;  %v216_v2 = vpop.f32.mrb[3].mxu1 }
 0x118   :  { %v219_v3 = vmax.f32 %v173_v59, 0.0  ;;  %v221_v4 = vmax.f32 %v214_v60, 0.0 }
 0x119   :  { %v224_v5 = vpack.c.bf16 %v220_v0, %v220_v0  ;;  %v222_v8 = vpack.c.bf16 %v218_v63, %v218_v63 }
 0x11a   :  { %v223_v6 = vpack.c.bf16 %v219_v3, %v219_v3  ;;  %v225_v7 = vpack.c.bf16 %v221_v4, %v221_v4 }
 0x11c   :  { %521 = vmatprep.mubr.bf16.mxu0 %v223_v6  ;;  %561 = vmatprep.mubr.bf16.mxu1 %v225_v7 }
 0x11d   :  { %522 = vmatmul.mubr.bf16.vlgmr.msra.gmra.mrb[4].mxu0 %v222_v8  ;;  %562 = vmatmul.mubr.bf16.vlgmr.msra.gmra.mrb[4].mxu1 %v224_v5 }
 0x1f0   :  { %v654_v9 = vpop.f32.mrb[4].mxu0  ;;  %v676_v10 = vpop.f32.mrb[4].mxu1 }
 0x1f1   :  { %v655_v12 = vpop.f32.mrb[5].mxu0  ;;  %v677_v13 = vpop.f32.mrb[5].mxu1 }
 0x1f2   :  { %v656_v14 = vadd.f32 %v655_v12, %v654_v9  ;;  %v678_v15 = vadd.f32 %v677_v13, %v676_v10  ;;  %v657_v16 = vpop.f32.mrb[6].mxu0  ;;  %v679_v17 = vpop.f32.mrb[6].mxu1 }
 0x1f3   :  { %v658_v18 = vpop.f32.mrb[7].mxu0  ;;  %v680_v19 = vpop.f32.mrb[7].mxu1 }
 0x1f4   :  { %v524_v20 = vadd.f32 %v656_v14, %v605_v11 }
 0x1f6   :  { %v564_v21 = vadd.f32 %v678_v15, %v524_v20 }
 0x1f8   :  { %569 = vmax.xlane.f32.xlu0 %v564_v21 }
 0x285   :  { %v570_v22 = vpop.xlane.xlu0 %569 }
 0x286   :  { %v571_v23 = vsub.f32 %v564_v21, %v570_v22 }
 0x288   :  { %v572_v24 = vmul.f32 1.442695, %v571_v23 }
 0x28a   :  { %735 = vpow2.f32 %v572_v24 }
 0x294   :  { %v736_v25 = vpop.eup %735 }
 0x295   :  { %574 = vadd.xlane.f32.xlu0 %v736_v25 }
 0x322   :  { %v575_v26 = vpop.xlane.xlu0 %574 }
 0x323   :  { %737 = vrcp.f32 %v575_v26 }
 0x32d   :  { %v738_v27 = vpop.eup %737 }
 0x32e   :  { %v577_v28 = vmul.f32 %v738_v27, %v736_v25 }
 0x330   :  { %578 = vst [vmem:[#allocation8] sm:$0xff] %v577_v28 }
 0x331   :  { %816 = shalt.err (!%p813_p0)
}
 0x332   :  { %s817_s12 = scalar_lea.hbm %s931_s5, 128 }
 0x333   :  { %p818_p1 = scmp.ne.s32.totalorder %s931_s5, %s817_s12  ;;  %p821_p2 = scmp.lt.u32.totalorder %s817_s12, %s931_s5 }
 0x335   :  { %p823_p3 = pnand %p821_p2, %p818_p1 }
 0x337   :  { %826 = shalt.err (!%p823_p3)
}
 0x338   :  { %588 = dma.vmem_to_hbm [thread:$0]  %s586_s8, 128, %s931_s5, [#allocation4]  }
 0x339   :  { %831 = dma.done.wait [#allocation4], 128  }
 0x33a   :  { %832 = vsyncadd [#allocation4], 4294967168 }
 0x33b   :  { %592 = vsyncpa [#allocation3], 1 }
 0x33c   :  { %593 = vsyncpa [#allocation6], 1 }
 0x33d   :  { %594 = vsyncpa [#allocation4], 1 }

</bundles_post_ra>
